<compile_context>
chip_gen: v7x
topology: tpu7x:2x2x1
jax: 0.10.0
libtpu: 0.0.40
codegen_flags: <defaults>
</compile_context>

<pallas_src>
import jax
import jax.numpy as jnp
from jax.experimental import pallas as pl
from jax.experimental.pallas import tpu as pltpu

IN_CHANNELS = 3
OUT_CHANNELS = 1
HIDDEN = 40
N_LAYERS = 7  # 6 hidden (tanh) + 1 output (no activation)


def mlp_kernel(x_ref, w_in_ref, w_hid_ref, b_ref, o_ref):
    # x_ref:     [IN_CHANNELS, tile_n]          (batch on lanes)
    # w_in_ref:  [HIDDEN, IN_CHANNELS]          torch-native [out, in]
    # w_hid_ref: [N_LAYERS-1, HIDDEN, HIDDEN]   layers 1..6 (last layer zero-padded)
    # b_ref:     [N_LAYERS, HIDDEN, 1]          biases (zero-padded)
    # o_ref:     [OUT_CHANNELS, tile_n]         lane-dense output tile
    h = x_ref[...].astype(jnp.float32)  # mirrors x.to(torch.float32)

    # Layer 0: [40,3] @ [3,tile_n] -> [40,tile_n]
    h = jnp.dot(w_in_ref[...], h, preferred_element_type=jnp.float32) + b_ref[0]
    h = jnp.tanh(h)

    # Layers 1..6 (static unrolled loop; layer 6 weights/bias are zero-padded
    # to [40,40]/[40,1] so only row 0 of the final result is meaningful).
    for layer in range(1, N_LAYERS):
        h = jnp.dot(w_hid_ref[layer - 1], h,
                    preferred_element_type=jnp.float32) + b_ref[layer]
        if layer < N_LAYERS - 1:
            h = jnp.tanh(h)

    o_ref[...] = h[:OUT_CHANNELS, :].astype(o_ref.dtype)


def make_params(key, in_channels=IN_CHANNELS, out_channels=OUT_CHANNELS,
                hidden=HIDDEN):
    """Xavier-normal weights (torch-native [out, in]), zero biases."""
    dims = [in_channels] + [hidden] * (N_LAYERS - 1) + [out_channels]
    params = []
    for i in range(N_LAYERS):
        fan_in, fan_out = dims[i], dims[i + 1]
        key, sub = jax.random.split(key)
        std = (2.0 / (fan_in + fan_out)) ** 0.5
        w = std * jax.random.normal(sub, (fan_out, fan_in), dtype=jnp.float32)
        b = jnp.zeros((fan_out,), dtype=jnp.float32)  # nn.init.constant_(bias, 0)
        params.append((w, b))
    return params


def _pack_params(params):
    """Fold the per-layer params into 3 arrays for the kernel."""
    w_in = params[0][0]                                     # [40, 3]
    w_hid = jnp.zeros((N_LAYERS - 1, HIDDEN, HIDDEN), jnp.float32)
    b_pack = jnp.zeros((N_LAYERS, HIDDEN, 1), jnp.float32)
    b0 = params[0][1]
    b_pack = b_pack.at[0, :b0.shape[0], 0].set(b0)
    for i in range(1, N_LAYERS):
        w, b = params[i]
        w_hid = w_hid.at[i - 1, :w.shape[0], :w.shape[1]].set(w)
        b_pack = b_pack.at[i, :b.shape[0], 0].set(b)
    return w_in, w_hid, b_pack


def mlp_forward(x, params, *, tile_n=512):
    """x: [N, IN_CHANNELS] -> [N, OUT_CHANNELS] (matches the torch module)."""
    n, in_c = x.shape
    assert in_c == IN_CHANNELS
    # Keep tiles lane-dense (multiple of 128) but shrink for tiny batches so we
    # don't pad 16 rows up to 512. For large N, tile_n=512 keeps the grid long
    # enough (>=4 steps once N>=2048) to feed both v7x TensorCores.
    tile_n = min(tile_n, max(128, -(-n // 128) * 128))
    n_pad = -(-n // tile_n) * tile_n
    grid = (n_pad // tile_n,)

    # Transpose + zero-pad so the batch sits on the lane axis.
    x_t = jnp.zeros((IN_CHANNELS, n_pad), jnp.float32)
    x_t = x_t.at[:, :n].set(x.astype(jnp.float32).T)

    w_in, w_hid, b_pack = _pack_params(params)

    out_pad = pl.pallas_call(
        mlp_kernel,
        out_shape=jax.ShapeDtypeStruct((OUT_CHANNELS, n_pad), jnp.float32),
        grid_spec=pltpu.PrefetchScalarGridSpec(
            num_scalar_prefetch=0,
            grid=grid,
            in_specs=[
                pl.BlockSpec((IN_CHANNELS, tile_n), lambda i: (0, i)),
                pl.BlockSpec((HIDDEN, IN_CHANNELS), lambda i: (0, 0)),
                pl.BlockSpec((N_LAYERS - 1, HIDDEN, HIDDEN),
                             lambda i: (0, 0, 0)),
                pl.BlockSpec((N_LAYERS, HIDDEN, 1), lambda i: (0, 0, 0)),
            ],
            out_specs=pl.BlockSpec((OUT_CHANNELS, tile_n), lambda i: (0, i)),
        ),
        compiler_params=pltpu.CompilerParams(
            dimension_semantics=("parallel",)),
    )(x_t, w_in, w_hid, b_pack)

    return out_pad[:, :n].T  # back to [N, OUT_CHANNELS]


def mlp_reference(x, params):
    h = x.astype(jnp.float32)
    for layer, (w, b) in enumerate(params):
        h = h @ w.T + b
        if layer < N_LAYERS - 1:
            h = jnp.tanh(h)
    return h


if __name__ == "__main__":
    key = jax.random.PRNGKey(0)
    key, kx = jax.random.split(key)
    batch = 16
    x = jax.random.normal(kx, (batch, IN_CHANNELS), dtype=jnp.float32)
    params = make_params(key)

    out = mlp_forward(x, params)
    out = jax.block_until_ready(out)

    ref = mlp_reference(x, params)
    assert out.shape == (batch, OUT_CHANNELS)
    assert jnp.allclose(out, ref, atol=2e-5, rtol=2e-5), (
        float(jnp.max(jnp.abs(out - ref))))
    print("KERNEL_OK")
</pallas_src>

<mosaic_0001>
module attributes {stable_mosaic.version = 11 : i64} {
  func.func @mlp_kernel(%arg0: i32, %arg1: memref<3x128xf32, #tpu.memory_space<vmem>>, %arg2: memref<40x3xf32, #tpu.memory_space<vmem>>, %arg3: memref<6x40x40xf32, #tpu.memory_space<vmem>>, %arg4: memref<7x40x1xf32, #tpu.memory_space<vmem>>, %arg5: memref<1x128xf32, #tpu.memory_space<vmem>>) attributes {dimension_semantics = [#tpu.dimension_semantics<parallel>], iteration_bounds = array<i64: 1>, scalar_prefetch = 0 : i64, scratch_operands = 0 : i64, tpu.core_type = #tpu.core_type<tc>, window_params = [{transform_indices = @transform_0, window_bounds = array<i64: 3, 128>}, {pipeline_mode = #tpu.pipeline_mode<synchronous>, transform_indices = @transform_1, window_bounds = array<i64: 40, 3>}, {pipeline_mode = #tpu.pipeline_mode<synchronous>, transform_indices = @transform_2, window_bounds = array<i64: 6, 40, 40>}, {pipeline_mode = #tpu.pipeline_mode<synchronous>, transform_indices = @transform_3, window_bounds = array<i64: 7, 40, 1>}, {transform_indices = @transform_4, window_bounds = array<i64: 1, 128>}]} {
    %c0 = arith.constant 0 : index
    %c0_0 = arith.constant 0 : index
    %0 = vector.load %arg1[%c0, %c0_0] : memref<3x128xf32, #tpu.memory_space<vmem>>, vector<3x128xf32>
    %c0_1 = arith.constant 0 : index
    %c0_2 = arith.constant 0 : index
    %1 = vector.load %arg2[%c0_1, %c0_2] : memref<40x3xf32, #tpu.memory_space<vmem>>, vector<40x3xf32>
    %cst = arith.constant dense<0.000000e+00> : vector<40x128xf32>
    %2 = tpu.matmul %1, %0, %cst {dimension_numbers = #tpu.dot_dimension_numbers<[1], [0], [0], [1], [0, 0, 1, 1], [], []>} : vector<40x3xf32>, vector<3x128xf32>, vector<40x128xf32> -> vector<40x128xf32>
    %c0_3 = arith.constant 0 : index
    %c0_4 = arith.constant 0 : index
    %c0_5 = arith.constant 0 : index
    %3 = vector.load %arg4[%c0_3, %c0_4, %c0_5] : memref<7x40x1xf32, #tpu.memory_space<vmem>>, vector<1x40x1xf32>
    %4 = vector.shape_cast %3 : vector<1x40x1xf32> to vector<40x1xf32>
    %5 = vector.broadcast %4 : vector<40x1xf32> to vector<40x128xf32>
    %6 = arith.addf %2, %5 : vector<40x128xf32>
    %7 = math.tanh %6 : vector<40x128xf32>
    %c0_6 = arith.constant 0 : index
    %c0_7 = arith.constant 0 : index
    %c0_8 = arith.constant 0 : index
    %8 = vector.load %arg3[%c0_6, %c0_7, %c0_8] : memref<6x40x40xf32, #tpu.memory_space<vmem>>, vector<1x40x40xf32>
    %9 = vector.shape_cast %8 : vector<1x40x40xf32> to vector<40x40xf32>
    %cst_9 = arith.constant dense<0.000000e+00> : vector<40x128xf32>
    %10 = tpu.matmul %9, %7, %cst_9 {dimension_numbers = #tpu.dot_dimension_numbers<[1], [0], [0], [1], [0, 0, 1, 1], [], []>} : vector<40x40xf32>, vector<40x128xf32>, vector<40x128xf32> -> vector<40x128xf32>
    %c1 = arith.constant 1 : index
    %c0_10 = arith.constant 0 : index
    %c0_11 = arith.constant 0 : index
    %11 = vector.load %arg4[%c1, %c0_10, %c0_11] : memref<7x40x1xf32, #tpu.memory_space<vmem>>, vector<1x40x1xf32>
    %12 = vector.shape_cast %11 : vector<1x40x1xf32> to vector<40x1xf32>
    %13 = vector.broadcast %12 : vector<40x1xf32> to vector<40x128xf32>
    %14 = arith.addf %10, %13 : vector<40x128xf32>
    %15 = math.tanh %14 : vector<40x128xf32>
    %c1_12 = arith.constant 1 : index
    %c0_13 = arith.constant 0 : index
    %c0_14 = arith.constant 0 : index
    %16 = vector.load %arg3[%c1_12, %c0_13, %c0_14] : memref<6x40x40xf32, #tpu.memory_space<vmem>>, vector<1x40x40xf32>
    %17 = vector.shape_cast %16 : vector<1x40x40xf32> to vector<40x40xf32>
    %cst_15 = arith.constant dense<0.000000e+00> : vector<40x128xf32>
    %18 = tpu.matmul %17, %15, %cst_15 {dimension_numbers = #tpu.dot_dimension_numbers<[1], [0], [0], [1], [0, 0, 1, 1], [], []>} : vector<40x40xf32>, vector<40x128xf32>, vector<40x128xf32> -> vector<40x128xf32>
    %c2 = arith.constant 2 : index
    %c0_16 = arith.constant 0 : index
    %c0_17 = arith.constant 0 : index
    %19 = vector.load %arg4[%c2, %c0_16, %c0_17] : memref<7x40x1xf32, #tpu.memory_space<vmem>>, vector<1x40x1xf32>
    %20 = vector.shape_cast %19 : vector<1x40x1xf32> to vector<40x1xf32>
    %21 = vector.broadcast %20 : vector<40x1xf32> to vector<40x128xf32>
    %22 = arith.addf %18, %21 : vector<40x128xf32>
    %23 = math.tanh %22 : vector<40x128xf32>
    %c2_18 = arith.constant 2 : index
    %c0_19 = arith.constant 0 : index
    %c0_20 = arith.constant 0 : index
    %24 = vector.load %arg3[%c2_18, %c0_19, %c0_20] : memref<6x40x40xf32, #tpu.memory_space<vmem>>, vector<1x40x40xf32>
    %25 = vector.shape_cast %24 : vector<1x40x40xf32> to vector<40x40xf32>
    %cst_21 = arith.constant dense<0.000000e+00> : vector<40x128xf32>
    %26 = tpu.matmul %25, %23, %cst_21 {dimension_numbers = #tpu.dot_dimension_numbers<[1], [0], [0], [1], [0, 0, 1, 1], [], []>} : vector<40x40xf32>, vector<40x128xf32>, vector<40x128xf32> -> vector<40x128xf32>
    %c3 = arith.constant 3 : index
    %c0_22 = arith.constant 0 : index
    %c0_23 = arith.constant 0 : index
    %27 = vector.load %arg4[%c3, %c0_22, %c0_23] : memref<7x40x1xf32, #tpu.memory_space<vmem>>, vector<1x40x1xf32>
    %28 = vector.shape_cast %27 : vector<1x40x1xf32> to vector<40x1xf32>
    %29 = vector.broadcast %28 : vector<40x1xf32> to vector<40x128xf32>
    %30 = arith.addf %26, %29 : vector<40x128xf32>
    %31 = math.tanh %30 : vector<40x128xf32>
    %c3_24 = arith.constant 3 : index
    %c0_25 = arith.constant 0 : index
    %c0_26 = arith.constant 0 : index
    %32 = vector.load %arg3[%c3_24, %c0_25, %c0_26] : memref<6x40x40xf32, #tpu.memory_space<vmem>>, vector<1x40x40xf32>
    %33 = vector.shape_cast %32 : vector<1x40x40xf32> to vector<40x40xf32>
    %cst_27 = arith.constant dense<0.000000e+00> : vector<40x128xf32>
    %34 = tpu.matmul %33, %31, %cst_27 {dimension_numbers = #tpu.dot_dimension_numbers<[1], [0], [0], [1], [0, 0, 1, 1], [], []>} : vector<40x40xf32>, vector<40x128xf32>, vector<40x128xf32> -> vector<40x128xf32>
    %c4 = arith.constant 4 : index
    %c0_28 = arith.constant 0 : index
    %c0_29 = arith.constant 0 : index
    %35 = vector.load %arg4[%c4, %c0_28, %c0_29] : memref<7x40x1xf32, #tpu.memory_space<vmem>>, vector<1x40x1xf32>
    %36 = vector.shape_cast %35 : vector<1x40x1xf32> to vector<40x1xf32>
    %37 = vector.broadcast %36 : vector<40x1xf32> to vector<40x128xf32>
    %38 = arith.addf %34, %37 : vector<40x128xf32>
    %39 = math.tanh %38 : vector<40x128xf32>
    %c4_30 = arith.constant 4 : index
    %c0_31 = arith.constant 0 : index
    %c0_32 = arith.constant 0 : index
    %40 = vector.load %arg3[%c4_30, %c0_31, %c0_32] : memref<6x40x40xf32, #tpu.memory_space<vmem>>, vector<1x40x40xf32>
    %41 = vector.shape_cast %40 : vector<1x40x40xf32> to vector<40x40xf32>
    %cst_33 = arith.constant dense<0.000000e+00> : vector<40x128xf32>
    %42 = tpu.matmul %41, %39, %cst_33 {dimension_numbers = #tpu.dot_dimension_numbers<[1], [0], [0], [1], [0, 0, 1, 1], [], []>} : vector<40x40xf32>, vector<40x128xf32>, vector<40x128xf32> -> vector<40x128xf32>
    %c5 = arith.constant 5 : index
    %c0_34 = arith.constant 0 : index
    %c0_35 = arith.constant 0 : index
    %43 = vector.load %arg4[%c5, %c0_34, %c0_35] : memref<7x40x1xf32, #tpu.memory_space<vmem>>, vector<1x40x1xf32>
    %44 = vector.shape_cast %43 : vector<1x40x1xf32> to vector<40x1xf32>
    %45 = vector.broadcast %44 : vector<40x1xf32> to vector<40x128xf32>
    %46 = arith.addf %42, %45 : vector<40x128xf32>
    %47 = math.tanh %46 : vector<40x128xf32>
    %c5_36 = arith.constant 5 : index
    %c0_37 = arith.constant 0 : index
    %c0_38 = arith.constant 0 : index
    %48 = vector.load %arg3[%c5_36, %c0_37, %c0_38] : memref<6x40x40xf32, #tpu.memory_space<vmem>>, vector<1x40x40xf32>
    %49 = vector.shape_cast %48 : vector<1x40x40xf32> to vector<40x40xf32>
    %cst_39 = arith.constant dense<0.000000e+00> : vector<40x128xf32>
    %50 = tpu.matmul %49, %47, %cst_39 {dimension_numbers = #tpu.dot_dimension_numbers<[1], [0], [0], [1], [0, 0, 1, 1], [], []>} : vector<40x40xf32>, vector<40x128xf32>, vector<40x128xf32> -> vector<40x128xf32>
    %c6 = arith.constant 6 : index
    %c0_40 = arith.constant 0 : index
    %c0_41 = arith.constant 0 : index
    %51 = vector.load %arg4[%c6, %c0_40, %c0_41] : memref<7x40x1xf32, #tpu.memory_space<vmem>>, vector<1x40x1xf32>
    %52 = vector.shape_cast %51 : vector<1x40x1xf32> to vector<40x1xf32>
    %53 = vector.broadcast %52 : vector<40x1xf32> to vector<40x128xf32>
    %54 = arith.addf %50, %53 : vector<40x128xf32>
    %55 = vector.extract_strided_slice %54 {offsets = [0, 0], sizes = [1, 128], strides = [1, 1]} : vector<40x128xf32> to vector<1x128xf32>
    %c0_42 = arith.constant 0 : index
    %c0_43 = arith.constant 0 : index
    %56 = vector.load %arg5[%c0_42, %c0_43] : memref<1x128xf32, #tpu.memory_space<vmem>>, vector<1x128xf32>
    tpu.vector_store %arg5[%c0_42, %c0_43], %55 {strides = array<i32>} : memref<1x128xf32, #tpu.memory_space<vmem>>, vector<1x128xf32>,
    return
  }
  func.func @transform_0(%arg0: i32) -> (i32, i32) {
    %c0_i32 = arith.constant 0 : i32
    %c0_i32_0 = arith.constant 0 : i32
    return %c0_i32, %arg0 : i32, i32
  }
  func.func @transform_1(%arg0: i32) -> (i32, i32) {
    %c0_i32 = arith.constant 0 : i32
    %c0_i32_0 = arith.constant 0 : i32
    %c0_i32_1 = arith.constant 0 : i32
    return %c0_i32, %c0_i32_0 : i32, i32
  }
  func.func @transform_2(%arg0: i32) -> (i32, i32, i32) {
    %c0_i32 = arith.constant 0 : i32
    %c0_i32_0 = arith.constant 0 : i32
    %c0_i32_1 = arith.constant 0 : i32
    %c0_i32_2 = arith.constant 0 : i32
    return %c0_i32, %c0_i32_0, %c0_i32_1 : i32, i32, i32
  }
  func.func @transform_3(%arg0: i32) -> (i32, i32, i32) {
    %c0_i32 = arith.constant 0 : i32
    %c0_i32_0 = arith.constant 0 : i32
    %c0_i32_1 = arith.constant 0 : i32
    %c0_i32_2 = arith.constant 0 : i32
    return %c0_i32, %c0_i32_0, %c0_i32_1 : i32, i32, i32
  }
  func.func @transform_4(%arg0: i32) -> (i32, i32) {
    %c0_i32 = arith.constant 0 : i32
    %c0_i32_0 = arith.constant 0 : i32
    return %c0_i32, %arg0 : i32, i32
  }
}

</mosaic_0001>

<bundles_post_ra>
// kernel: tpu_custom_call.1
= control target key start
LH: loop header
LB: loop body
LE: loop exit
PB: predicated region body
PF: predicated region fallthrough
CT: control target
= control target key end

     0   :  { %vm70_vm0 = vcmask 1042432   ;;  %v1506_v1 = vmov 0.0   ;;  %vm54_vm1 = vcmask 23552   ;;  %vm1507_vm2 = vmmov 0   ;;  %s1874_s0 = inlined_call_operand.vmem [shape: f32[3,128], index: 0, kind: input, shape index: {}]   ;;  %s1875_s1 = inlined_call_operand.vmem [shape: f32[40,3], index: 1, kind: input, shape index: {}]   ;;  %s1876_s2 = inlined_call_operand.vmem [shape: f32[6,40,40], index: 2, kind: input, shape index: {}]   ;;  %s1877_s3 = inlined_call_operand.vmem [shape: f32[7,40,1], index: 3, kind: input, shape index: {}]   ;;  %s1878_s4 = inlined_call_operand.hbm [shape: f32[1,128], index: 4, kind: output, shape index: {}]  }
   0x1   :  { %v18_v0 = vld [vmem:[%s1874_s0] sm:$0x7]  ;;  %1210 = vmatprep.subr.mxu0 %v1506_v1  ;;  %1413 = vmatprep.subr.mxu1 %v1506_v1  ;;  %v22_v3 = vld [vmem:[%s1875_s1 + $0x18] sm:$0xff]  ;;  %v26_v5 = vld [vmem:[%s1877_s3 + $0x10] sm:$0xff]  ;;  %v1508_v8 = vmov 0  }
   0x2   :  { %v19_v2 = vld [vmem:[%s1875_s1] sm:$0xff]  ;;  %1211 = vmatpush3.msk.msra.mxu0 %vm70_vm0, %v18_v0  ;;  %1414 = vmatpush3.msk.msra.mxu1 %vm70_vm0, %v18_v0  ;;  %v20_v6 = vld [vmem:[%s1875_s1 + $0x8] sm:$0xff]  ;;  %v27_v10 = vld [vmem:[%s1877_s3 + $0x18] sm:$0xff] }
   0x3   :  { %1212 = vmatprep.mubr.msk.f32.mxu0 %vm1507_vm2, %v1506_v1  ;;  %1221 = vmatprep.mubr.msk.f32.mxu1 %vm1507_vm2, %v1506_v1  ;;  %v24_v4 = vld [vmem:[%s1877_s3] sm:$0xff]  ;;  %v25_v9 = vld [vmem:[%s1877_s3 + $0x8] sm:$0xff]  ;;  %v21_v11 = vld [vmem:[%s1875_s1 + $0x10] sm:$0xff] }
   0x4   :  { %1213 = vmatmul.mubr.msk.f32.vlgmr.msra.gmra.mrb[0].mxu0 %vm54_vm1, %v19_v2  ;;  %1222 = vmatmul.mubr.msk.f32.vlgmr.msra.gmra.mrb[0].mxu1 %vm54_vm1, %v22_v3  ;;  %v23_v7 = vld [vmem:[%s1875_s1 + $0x20] sm:$0xff]  ;;  %v1059_v13 = vld [vmem:[%s1877_s3 + $0x28] sm:$0xff] }
   0x5   :  { %1215 = vmatprep.mubr.msk.f32.mxu0 %vm1507_vm2, %v1506_v1  ;;  %1224 = vmatprep.mubr.msk.f32.mxu1 %vm1507_vm2, %v1506_v1  ;;  %v28_v12 = vld [vmem:[%s1877_s3 + $0x20] sm:$0xff] }
   0x6   :  { %1420 = vset.pattern.permute.xlu0 %v1508_v8  ;;  %1421 = vset.pattern.permute.xlu1 %v1508_v8 }
   0x7   :  { %31 = vperm.xlu0 %1420, %v24_v4   ;;  %41 = vperm.xlu1 %1421, %v26_v5  }
   0x8   :  { %1216 = vmatmul.mubr.msk.f32.gmra.mrb[2].mxu0 %vm54_vm1, %v20_v6  ;;  %1225 = vmatmul.mubr.msk.f32.gmra.mrb[2].mxu1 %vm54_vm1, %v23_v7 }
   0x9   :  { %1218 = vmatprep.mubr.msk.f32.mxu0 %vm1507_vm2, %v1506_v1  ;;  %1237 = vmatprep.mubr.msk.f32.mxu1 %vm1507_vm2, %v1506_v1 }
   0xb   :  { %36 = vperm.xlu0 %1420, %v25_v9   ;;  %46 = vperm.xlu1 %1421, %v27_v10  }
   0xc   :  { %1219 = vmatmul.mubr.msk.f32.gmra.mrb[4].mxu0 %vm54_vm1, %v21_v11 }
   0xd   :  { %9 = vsyncpa [#allocation3], 0  ;;  %1262 = vmatprep.mubr.msk.f32.mxu0 %vm1507_vm2, %v1506_v1  ;;  %v1060_v14 = vld [vmem:[%s1877_s3 + $0x30] sm:$0xff]  ;;  %v1061_v15 = vld [vmem:[%s1877_s3 + $0x38] sm:$0xff]  ;;  %v1509_v39 = vmov 0.0|0.0   ;;  %vm205_vm3 = vcmask 326656  }
   0xe   :  { %v1062_v16 = vld [vmem:[%s1877_s3 + $0x40] sm:$0xff]  ;;  %v1063_v17 = vld [vmem:[%s1877_s3 + $0x48] sm:$0xff]  ;;  %v1074_v18 = vld [vmem:[%s1877_s3 + $0x50] sm:$0xff]  ;;  %1377 = vmatprep.subr.bf16.mxu1 %v1509_v39  ;;  %1383 = vmatprep.subr.bf16.mxu0 %v1509_v39  ;;  %s1510_s7 = smov [#allocation2]  }
   0xf   :  { %51 = vperm.xlu0 %1420, %v28_v12   ;;  %182 = vperm.xlu1 %1421, %v1059_v13   ;;  %v1075_v19 = vld [vmem:[%s1877_s3 + $0x58] sm:$0xff]  ;;  %v1076_v20 = vld [vmem:[%s1877_s3 + $0x60] sm:$0xff]  ;;  %v1077_v21 = vld [vmem:[%s1877_s3 + $0x68] sm:$0xff]  ;;  %s1045_s8 = sshll.u32 %s1510_s7, 4  ;;  %s1046_s8 = int_to_ptr.vmem [resolvable:$true] %s1045_s8 }
  0x10   :  { %v1078_v22 = vld [vmem:[%s1877_s3 + $0x70] sm:$0xff]  ;;  %v1089_v23 = vld [vmem:[%s1877_s3 + $0x78] sm:$0xff]  ;;  %v1090_v24 = vld [vmem:[%s1877_s3 + $0x80] sm:$0xff]  ;;  %s1482_s9 = scalar_lea.vmem %s1046_s8, 16  ;;  %s1486_s10 = scalar_lea.vmem %s1046_s8, 32 }
  0x11   :  { %v1091_v25 = vld [vmem:[%s1877_s3 + $0x88] sm:$0xff]  ;;  %v1092_v26 = vld [vmem:[%s1877_s3 + $0x90] sm:$0xff]  ;;  %v1093_v27 = vld [vmem:[%s1877_s3 + $0x98] sm:$0xff]  ;;  %p1483_p0 = scmp.ne.s32.totalorder %s1046_s8, %s1482_s9  ;;  %p1487_p1 = scmp.lt.s32.totalorder %s1046_s8, %s1046_s8 }
  0x12   :  { %v1104_v28 = vld [vmem:[%s1877_s3 + $0xa0] sm:$0xff]  ;;  %v1105_v29 = vld [vmem:[%s1877_s3 + $0xa8] sm:$0xff]  ;;  %v1106_v30 = vld [vmem:[%s1877_s3 + $0xb0] sm:$0xff]  ;;  %p1488_p2 = scmp.lt.s32.totalorder %s1486_s10, %s1482_s9 }
  0x13   :  { %187 = vperm.xlu0 %1420, %v1060_v14   ;;  %192 = vperm.xlu1 %1421, %v1061_v15   ;;  %v1107_v31 = vld [vmem:[%s1877_s3 + $0xb8] sm:$0xff]  ;;  %v1108_v32 = vld [vmem:[%s1877_s3 + $0xc0] sm:$0xff]  ;;  %v1119_v33 = vld [vmem:[%s1877_s3 + $0xc8] sm:$0xff] }
  0x14   :  { %v1120_v34 = vld [vmem:[%s1877_s3 + $0xd0] sm:$0xff]  ;;  %v1121_v35 = vld [vmem:[%s1877_s3 + $0xd8] sm:$0xff]  ;;  %v1122_v36 = vld [vmem:[%s1877_s3 + $0xe0] sm:$0xff]  ;;  %p1489_p3 = por %p1488_p2, %p1487_p1 }
  0x15   :  { %v1123_v37 = vld [vmem:[%s1877_s3 + $0xe8] sm:$0xff]  ;;  %v1134_v38 = vld [vmem:[%s1877_s3 + $0xf0] sm:$0xff]  ;;  %v169_v3 = vld [vmem:[%s1876_s2] sm:$0xff] }
  0x16   :  { %v170_v5 = vld [vmem:[%s1876_s2 + $0x8] sm:$0xff]  ;;  %v171_v6 = vld [vmem:[%s1876_s2 + $0x10] sm:$0xff]  ;;  %v172_v7 = vld [vmem:[%s1876_s2 + $0x18] sm:$0xff]  ;;  %p1490_p4 = pnand %p1489_p3, %p1483_p0 }
  0x17   :  { %197 = vperm.xlu0 %1420, %v1062_v16   ;;  %202 = vperm.xlu1 %1421, %v1063_v17   ;;  %v173_v8 = vld [vmem:[%s1876_s2 + $0x20] sm:$0xff] }
  0x1b   :  { %330 = vperm.xlu0 %1420, %v1074_v18   ;;  %335 = vperm.xlu1 %1421, %v1075_v19  }
  0x1f   :  { %340 = vperm.xlu0 %1420, %v1076_v20   ;;  %345 = vperm.xlu1 %1421, %v1077_v21  }
  0x23   :  { %350 = vperm.xlu0 %1420, %v1078_v22   ;;  %477 = vperm.xlu1 %1421, %v1089_v23  }
  0x27   :  { %482 = vperm.xlu0 %1420, %v1090_v24   ;;  %487 = vperm.xlu1 %1421, %v1091_v25  }
  0x2b   :  { %492 = vperm.xlu0 %1420, %v1092_v26   ;;  %497 = vperm.xlu1 %1421, %v1093_v27  }
  0x2f   :  { %624 = vperm.xlu0 %1420, %v1104_v28   ;;  %629 = vperm.xlu1 %1421, %v1105_v29  }
  0x33   :  { %634 = vperm.xlu0 %1420, %v1106_v30   ;;  %639 = vperm.xlu1 %1421, %v1107_v31  }
  0x37   :  { %644 = vperm.xlu0 %1420, %v1108_v32   ;;  %771 = vperm.xlu1 %1421, %v1119_v33  }
  0x3b   :  { %776 = vperm.xlu0 %1420, %v1120_v34   ;;  %781 = vperm.xlu1 %1421, %v1121_v35   ;;  %v1069_v35 = vld [vmem:[%s1876_s2 + $0x28] sm:$0xff] }
  0x3f   :  { %786 = vperm.xlu0 %1420, %v1122_v36   ;;  %791 = vperm.xlu1 %1421, %v1123_v37   ;;  %v1070_v37 = vld [vmem:[%s1876_s2 + $0x30] sm:$0xff] }
  0x43   :  { %918 = vperm.xlu0 %1420, %v1134_v38   ;;  %v1071_v38 = vld [vmem:[%s1876_s2 + $0x38] sm:$0xff] }
  0x86   :  { %v32_v40 = vpop.permute.xlu0 %31  ;;  %v42_v41 = vpop.permute.xlu1 %41 }
  0x8a   :  { %v37_v47 = vpop.permute.xlu0 %36  ;;  %v47_v48 = vpop.permute.xlu1 %46 }
  0x8e   :  { %v52_v58 = vpop.permute.xlu0 %51  ;;  %v183_v10 = vpop.permute.xlu1 %182 }
  0x92   :  { %v188_v13 = vpop.permute.xlu0 %187  ;;  %v193_v18 = vpop.permute.xlu1 %192 }
  0x96   :  { %v198_v21 = vpop.permute.xlu0 %197  ;;  %v203_v26 = vpop.permute.xlu1 %202 }
  0xd7   :  { %v140_v42 = vpop.f32.mrb[0].mxu0  ;;  %v155_v43 = vpop.f32.mrb[0].mxu1 }
  0xd8   :  { %v1214_v44 = vpop.f32.mrb[1].mxu0  ;;  %v1223_v45 = vpop.f32.mrb[1].mxu1  ;;  %v141_v46 = vadd.f32 %v140_v42, %v32_v40  ;;  %v156_v54 = vadd.f32 %v155_v43, %v47_v48  ;;  %v1072_v40 = vld [vmem:[%s1876_s2 + $0x40] sm:$0xff] }
  0xd9   :  { %v331_v43 = vpop.permute.xlu0 %330 }
  0xda   :  { %1422 = vtanh.f32 %v141_v46  ;;  %v336_v46 = vpop.permute.xlu1 %335 }
  0xdb   :  { %v145_v49 = vpop.f32.mrb[2].mxu0  ;;  %v160_v50 = vpop.f32.mrb[2].mxu1 }
  0xdc   :  { %v146_v51 = vadd.f32 %v145_v49, %v37_v47  ;;  %v1217_v52 = vpop.f32.mrb[3].mxu0  ;;  %v1226_v53 = vpop.f32.mrb[3].mxu1  ;;  %v161_v59 = vadd.f32 %v160_v50, %v52_v58 }
  0xde   :  { %1424 = vtanh.f32 %v146_v51  ;;  %v341_v51 = vpop.permute.xlu0 %340 }
  0xdf   :  { %v150_v55 = vpop.f32.mrb[4].mxu0  ;;  %1426 = vtanh.f32 %v156_v54  ;;  %v346_v54 = vpop.permute.xlu1 %345 }
  0xe0   :  { %v151_v56 = vadd.f32 %v150_v55, %v42_v41  ;;  %v1220_v57 = vpop.f32.mrb[5].mxu0  ;;  %v1073_v41 = vld [vmem:[%s1876_s2 + $0x48] sm:$0xff] }
  0xe2   :  { %1428 = vtanh.f32 %v151_v56 }
  0xe3   :  { %1430 = vtanh.f32 %v161_v59  ;;  %v351_v59 = vpop.permute.xlu0 %350 }
  0xe4   :  { %v1423_v60 = vpop.eup %1422 }
  0xe8   :  { %v1425_v61 = vpop.eup %1424 }
  0xe9   :  { %v1378_v62 = vpack.c.bf16 %v1425_v61, %v1423_v60  ;;  %v1427_v63 = vpop.eup %1426 }
  0xeb   :  { %1379 = vmatpush3.bf16.msra.mxu1 %v1378_v62 }
  0xec   :  { %v1429_v0 = vpop.eup %1428  ;;  %1380 = vmatprep.subr.bf16.mxu1 %v1509_v39 }
  0xed   :  { %v1381_v2 = vpack.c.bf16 %v1427_v63, %v1429_v0  ;;  %v1431_v4 = vpop.eup %1430 }
  0xef   :  { %1382 = vmatpush3.bf16.msra.mxu1 %v1381_v2 }
  0xf0   :  { %1235 = vmatprep.subr.mxu1 %v1506_v1 }
  0xf3   :  { %1236 = vmatpush3.msra.mxu1 %v1431_v4 }
  0xf4   :  { %1238 = vmatmul.mubr.msk.f32.vlgmr.msra.gmra.mrb[4].mxu1 %vm205_vm3, %v169_v3  ;;  %1389 = vmatprep.subr.bf16.mxu1 %v1509_v39 }
  0xf5   :  { %1240 = vmatprep.mubr.msk.f32.mxu1 %vm1507_vm2, %v1506_v1 }
  0xf8   :  { %1241 = vmatmul.mubr.msk.f32.gmra.mrb[6].mxu1 %vm205_vm3, %v170_v5  ;;  %v1084_v5 = vld [vmem:[%s1876_s2 + $0x50] sm:$0xff] }
  0xf9   :  { %1243 = vmatprep.mubr.msk.f32.mxu1 %vm1507_vm2, %v1506_v1 }
  0xfc   :  { %1244 = vmatmul.mubr.msk.f32.gmra.mrb[8].mxu1 %vm205_vm3, %v171_v6 }
  0xfd   :  { %1246 = vmatprep.mubr.msk.f32.mxu1 %vm1507_vm2, %v1506_v1 }
 0x100   :  { %1247 = vmatmul.mubr.msk.f32.gmra.mrb[10].mxu1 %vm205_vm3, %v172_v7  ;;  %v1085_v7 = vld [vmem:[%s1876_s2 + $0x58] sm:$0xff] }
 0x101   :  { %1249 = vmatprep.mubr.msk.f32.mxu1 %vm1507_vm2, %v1506_v1 }
 0x104   :  { %1250 = vmatmul.mubr.msk.f32.gmra.mrb[12].mxu1 %vm205_vm3, %v173_v8  ;;  %v1086_v8 = vld [vmem:[%s1876_s2 + $0x60] sm:$0xff] }
 0x105   :  { %1287 = vmatprep.mubr.msk.f32.mxu1 %vm1507_vm2, %v1506_v1 }
 0x1c7   :  { %v287_v9 = vpop.f32.mrb[4].mxu1 }
 0x1c8   :  { %v1239_v11 = vpop.f32.mrb[5].mxu1  ;;  %v288_v12 = vadd.f32 %v287_v9, %v183_v10  ;;  %v1087_v9 = vld [vmem:[%s1876_s2 + $0x68] sm:$0xff]  ;;  %v1088_v10 = vld [vmem:[%s1876_s2 + $0x70] sm:$0xff] }
 0x1ca   :  { %1432 = vtanh.f32 %v288_v12  ;;  %v478_v12 = vpop.permute.xlu1 %477 }
 0x1cb   :  { %v292_v14 = vpop.f32.mrb[6].mxu1 }
 0x1cc   :  { %v293_v15 = vadd.f32 %v292_v14, %v188_v13  ;;  %v1242_v16 = vpop.f32.mrb[7].mxu1 }
 0x1ce   :  { %1434 = vtanh.f32 %v293_v15  ;;  %v483_v15 = vpop.permute.xlu0 %482 }
 0x1cf   :  { %v297_v17 = vpop.f32.mrb[8].mxu1 }
 0x1d0   :  { %v1245_v19 = vpop.f32.mrb[9].mxu1  ;;  %v298_v20 = vadd.f32 %v297_v17, %v193_v18 }
 0x1d2   :  { %1436 = vtanh.f32 %v298_v20  ;;  %v488_v20 = vpop.permute.xlu1 %487 }
 0x1d3   :  { %v302_v22 = vpop.f32.mrb[10].mxu1 }
 0x1d4   :  { %v303_v23 = vadd.f32 %v302_v22, %v198_v21  ;;  %v1248_v24 = vpop.f32.mrb[11].mxu1  ;;  %v1433_v25 = vpop.eup %1432 }
 0x1d6   :  { %1438 = vtanh.f32 %v303_v23  ;;  %v493_v23 = vpop.permute.xlu0 %492 }
 0x1d7   :  { %v307_v27 = vpop.f32.mrb[12].mxu1 }
 0x1d8   :  { %v1435_v28 = vpop.eup %1434  ;;  %v308_v29 = vadd.f32 %v307_v27, %v203_v26  ;;  %v1251_v30 = vpop.f32.mrb[13].mxu1 }
 0x1d9   :  { %v1384_v31 = vpack.c.bf16 %v1435_v28, %v1433_v25  ;;  %v498_v28 = vpop.permute.xlu1 %497 }
 0x1da   :  { %1440 = vtanh.f32 %v308_v29 }
 0x1db   :  { %1385 = vmatpush3.bf16.msra.mxu0 %v1384_v31 }
 0x1dc   :  { %1386 = vmatprep.subr.bf16.mxu0 %v1509_v39  ;;  %v1437_v32 = vpop.eup %1436 }
 0x1e0   :  { %v1439_v33 = vpop.eup %1438 }
 0x1e1   :  { %v1387_v34 = vpack.c.bf16 %v1439_v33, %v1437_v32 }
 0x1e3   :  { %1388 = vmatpush3.bf16.msra.mxu0 %v1387_v34 }
 0x1e4   :  { %1260 = vmatprep.subr.mxu0 %v1506_v1  ;;  %v1441_v36 = vpop.eup %1440 }
 0x1e7   :  { %1261 = vmatpush3.msra.mxu0 %v1441_v36 }
 0x1e8   :  { %1263 = vmatmul.mubr.msk.f32.vlgmr.msra.gmra.mrb[6].mxu0 %vm205_vm3, %v1069_v35  ;;  %1395 = vmatprep.subr.bf16.mxu0 %v1509_v39 }
 0x1e9   :  { %1265 = vmatprep.mubr.msk.f32.mxu0 %vm1507_vm2, %v1506_v1 }
 0x1ec   :  { %1266 = vmatmul.mubr.msk.f32.gmra.mrb[8].mxu0 %vm205_vm3, %v1070_v37  ;;  %v1099_v37 = vld [vmem:[%s1876_s2 + $0x78] sm:$0xff] }
 0x1ed   :  { %1268 = vmatprep.mubr.msk.f32.mxu0 %vm1507_vm2, %v1506_v1 }
 0x1f0   :  { %1269 = vmatmul.mubr.msk.f32.gmra.mrb[10].mxu0 %vm205_vm3, %v1071_v38 }
 0x1f1   :  { %1271 = vmatprep.mubr.msk.f32.mxu0 %vm1507_vm2, %v1506_v1 }
 0x1f4   :  { %1272 = vmatmul.mubr.msk.f32.gmra.mrb[12].mxu0 %vm205_vm3, %v1072_v40  ;;  %v1100_v40 = vld [vmem:[%s1876_s2 + $0x80] sm:$0xff] }
 0x1f5   :  { %1274 = vmatprep.mubr.msk.f32.mxu0 %vm1507_vm2, %v1506_v1 }
 0x1f8   :  { %1275 = vmatmul.mubr.msk.f32.gmra.mrb[14].mxu0 %vm205_vm3, %v1073_v41  ;;  %v1101_v41 = vld [vmem:[%s1876_s2 + $0x88] sm:$0xff] }
 0x1f9   :  { %1312 = vmatprep.mubr.msk.f32.mxu0 %vm1507_vm2, %v1506_v1 }
 0x2bb   :  { %v434_v42 = vpop.f32.mrb[6].mxu0 }
 0x2bc   :  { %v1264_v44 = vpop.f32.mrb[7].mxu0  ;;  %v435_v45 = vadd.f32 %v434_v42, %v331_v43  ;;  %v1102_v42 = vld [vmem:[%s1876_s2 + $0x90] sm:$0xff]  ;;  %v1103_v43 = vld [vmem:[%s1876_s2 + $0x98] sm:$0xff] }
 0x2be   :  { %1442 = vtanh.f32 %v435_v45  ;;  %v625_v45 = vpop.permute.xlu0 %624 }
 0x2bf   :  { %v439_v47 = vpop.f32.mrb[8].mxu0 }
 0x2c0   :  { %v440_v48 = vadd.f32 %v439_v47, %v336_v46  ;;  %v1267_v49 = vpop.f32.mrb[9].mxu0 }
 0x2c2   :  { %1444 = vtanh.f32 %v440_v48  ;;  %v630_v48 = vpop.permute.xlu1 %629 }
 0x2c3   :  { %v444_v50 = vpop.f32.mrb[10].mxu0 }
 0x2c4   :  { %v1270_v52 = vpop.f32.mrb[11].mxu0  ;;  %v445_v53 = vadd.f32 %v444_v50, %v341_v51 }
 0x2c6   :  { %1446 = vtanh.f32 %v445_v53  ;;  %v635_v53 = vpop.permute.xlu0 %634 }
 0x2c7   :  { %v449_v55 = vpop.f32.mrb[12].mxu0 }
 0x2c8   :  { %v450_v56 = vadd.f32 %v449_v55, %v346_v54  ;;  %v1273_v57 = vpop.f32.mrb[13].mxu0  ;;  %v1443_v58 = vpop.eup %1442 }
 0x2ca   :  { %1448 = vtanh.f32 %v450_v56  ;;  %v640_v56 = vpop.permute.xlu1 %639 }
 0x2cb   :  { %v454_v60 = vpop.f32.mrb[14].mxu0 }
 0x2cc   :  { %v1445_v61 = vpop.eup %1444  ;;  %v455_v62 = vadd.f32 %v454_v60, %v351_v59  ;;  %v1276_v63 = vpop.f32.mrb[15].mxu0 }
 0x2cd   :  { %v1390_v0 = vpack.c.bf16 %v1445_v61, %v1443_v58  ;;  %v645_v61 = vpop.permute.xlu0 %644 }
 0x2ce   :  { %1450 = vtanh.f32 %v455_v62 }
 0x2cf   :  { %1391 = vmatpush3.bf16.msra.mxu1 %v1390_v0 }
 0x2d0   :  { %1392 = vmatprep.subr.bf16.mxu1 %v1509_v39  ;;  %v1447_v2 = vpop.eup %1446 }
 0x2d4   :  { %v1449_v3 = vpop.eup %1448 }
 0x2d5   :  { %v1393_v4 = vpack.c.bf16 %v1449_v3, %v1447_v2 }
 0x2d7   :  { %1394 = vmatpush3.bf16.msra.mxu1 %v1393_v4 }
 0x2d8   :  { %1285 = vmatprep.subr.mxu1 %v1506_v1  ;;  %v1451_v6 = vpop.eup %1450 }
 0x2db   :  { %1286 = vmatpush3.msra.mxu1 %v1451_v6 }
 0x2dc   :  { %1288 = vmatmul.mubr.msk.f32.vlgmr.msra.gmra.mrb[14].mxu1 %vm205_vm3, %v1084_v5  ;;  %1401 = vmatprep.subr.bf16.mxu1 %v1509_v39 }
 0x2dd   :  { %1290 = vmatprep.mubr.msk.f32.mxu1 %vm1507_vm2, %v1506_v1 }
 0x2e0   :  { %1291 = vmatmul.mubr.msk.f32.gmra.mrb[16].mxu1 %vm205_vm3, %v1085_v7  ;;  %v1114_v7 = vld [vmem:[%s1876_s2 + $0xa0] sm:$0xff] }
 0x2e1   :  { %1293 = vmatprep.mubr.msk.f32.mxu1 %vm1507_vm2, %v1506_v1 }
 0x2e4   :  { %1294 = vmatmul.mubr.msk.f32.gmra.mrb[18].mxu1 %vm205_vm3, %v1086_v8 }
 0x2e5   :  { %1296 = vmatprep.mubr.msk.f32.mxu1 %vm1507_vm2, %v1506_v1 }
 0x2e8   :  { %1297 = vmatmul.mubr.msk.f32.gmra.mrb[20].mxu1 %vm205_vm3, %v1087_v9  ;;  %v1115_v9 = vld [vmem:[%s1876_s2 + $0xa8] sm:$0xff] }
 0x2e9   :  { %1299 = vmatprep.mubr.msk.f32.mxu1 %vm1507_vm2, %v1506_v1 }
 0x2ec   :  { %1300 = vmatmul.mubr.msk.f32.gmra.mrb[22].mxu1 %vm205_vm3, %v1088_v10  ;;  %v1116_v10 = vld [vmem:[%s1876_s2 + $0xb0] sm:$0xff] }
 0x2ed   :  { %1337 = vmatprep.mubr.msk.f32.mxu1 %vm1507_vm2, %v1506_v1 }
 0x3af   :  { %v581_v11 = vpop.f32.mrb[14].mxu1 }
 0x3b0   :  { %v1289_v13 = vpop.f32.mrb[15].mxu1  ;;  %v582_v14 = vadd.f32 %v581_v11, %v478_v12  ;;  %v1117_v11 = vld [vmem:[%s1876_s2 + $0xb8] sm:$0xff]  ;;  %v1118_v12 = vld [vmem:[%s1876_s2 + $0xc0] sm:$0xff] }
 0x3b2   :  { %1452 = vtanh.f32 %v582_v14  ;;  %v772_v14 = vpop.permute.xlu1 %771 }
 0x3b3   :  { %v586_v16 = vpop.f32.mrb[16].mxu1 }
 0x3b4   :  { %v587_v17 = vadd.f32 %v586_v16, %v483_v15  ;;  %v1292_v18 = vpop.f32.mrb[17].mxu1 }
 0x3b6   :  { %1454 = vtanh.f32 %v587_v17  ;;  %v777_v17 = vpop.permute.xlu0 %776 }
 0x3b7   :  { %v591_v19 = vpop.f32.mrb[18].mxu1 }
 0x3b8   :  { %v1295_v21 = vpop.f32.mrb[19].mxu1  ;;  %v592_v22 = vadd.f32 %v591_v19, %v488_v20 }
 0x3ba   :  { %1456 = vtanh.f32 %v592_v22  ;;  %v782_v22 = vpop.permute.xlu1 %781 }
 0x3bb   :  { %v596_v24 = vpop.f32.mrb[20].mxu1 }
 0x3bc   :  { %v597_v25 = vadd.f32 %v596_v24, %v493_v23  ;;  %v1298_v26 = vpop.f32.mrb[21].mxu1  ;;  %v1453_v27 = vpop.eup %1452 }
 0x3be   :  { %1458 = vtanh.f32 %v597_v25  ;;  %v787_v25 = vpop.permute.xlu0 %786 }
 0x3bf   :  { %v601_v29 = vpop.f32.mrb[22].mxu1 }
 0x3c0   :  { %v1455_v30 = vpop.eup %1454  ;;  %v602_v31 = vadd.f32 %v601_v29, %v498_v28  ;;  %v1301_v32 = vpop.f32.mrb[23].mxu1 }
 0x3c1   :  { %v1396_v33 = vpack.c.bf16 %v1455_v30, %v1453_v27  ;;  %v792_v30 = vpop.permute.xlu1 %791 }
 0x3c2   :  { %1460 = vtanh.f32 %v602_v31 }
 0x3c3   :  { %1397 = vmatpush3.bf16.msra.mxu0 %v1396_v33 }
 0x3c4   :  { %1398 = vmatprep.subr.bf16.mxu0 %v1509_v39  ;;  %v1457_v34 = vpop.eup %1456 }
 0x3c8   :  { %v1459_v35 = vpop.eup %1458 }
 0x3c9   :  { %v1399_v36 = vpack.c.bf16 %v1459_v35, %v1457_v34 }
 0x3cb   :  { %1400 = vmatpush3.bf16.msra.mxu0 %v1399_v36 }
 0x3cc   :  { %1310 = vmatprep.subr.mxu0 %v1506_v1  ;;  %v1461_v38 = vpop.eup %1460 }
 0x3cf   :  { %1311 = vmatpush3.msra.mxu0 %v1461_v38 }
 0x3d0   :  { %1313 = vmatmul.mubr.msk.f32.vlgmr.msra.gmra.mrb[16].mxu0 %vm205_vm3, %v1099_v37  ;;  %1407 = vmatprep.subr.bf16.mxu0 %v1509_v39 }
 0x3d1   :  { %1315 = vmatprep.mubr.msk.f32.mxu0 %vm1507_vm2, %v1506_v1 }
 0x3d4   :  { %1316 = vmatmul.mubr.msk.f32.gmra.mrb[18].mxu0 %vm205_vm3, %v1100_v40  ;;  %v1129_v40 = vld [vmem:[%s1876_s2 + $0xc8] sm:$0xff] }
 0x3d5   :  { %1318 = vmatprep.mubr.msk.f32.mxu0 %vm1507_vm2, %v1506_v1 }
 0x3d8   :  { %1319 = vmatmul.mubr.msk.f32.gmra.mrb[20].mxu0 %vm205_vm3, %v1101_v41 }
 0x3d9   :  { %1321 = vmatprep.mubr.msk.f32.mxu0 %vm1507_vm2, %v1506_v1 }
 0x3dc   :  { %1322 = vmatmul.mubr.msk.f32.gmra.mrb[22].mxu0 %vm205_vm3, %v1102_v42  ;;  %v1131_v42 = vld [vmem:[%s1876_s2 + $0xd8] sm:$0xff] }
 0x3dd   :  { %1324 = vmatprep.mubr.msk.f32.mxu0 %vm1507_vm2, %v1506_v1 }
 0x3e0   :  { %1325 = vmatmul.mubr.msk.f32.gmra.mrb[24].mxu0 %vm205_vm3, %v1103_v43  ;;  %v1132_v43 = vld [vmem:[%s1876_s2 + $0xe0] sm:$0xff] }
 0x3e1   :  { %1362 = vmatprep.mubr.msk.f32.mxu0 %vm1507_vm2, %v1506_v1 }
 0x4a3   :  { %v728_v44 = vpop.f32.mrb[16].mxu0 }
 0x4a4   :  { %v1314_v46 = vpop.f32.mrb[17].mxu0  ;;  %v729_v47 = vadd.f32 %v728_v44, %v625_v45  ;;  %v1133_v44 = vld [vmem:[%s1876_s2 + $0xe8] sm:$0xff]  ;;  %v919_v45 = vpop.permute.xlu0 %918 }
 0x4a6   :  { %1462 = vtanh.f32 %v729_v47 }
 0x4a7   :  { %v733_v49 = vpop.f32.mrb[18].mxu0 }
 0x4a8   :  { %v734_v50 = vadd.f32 %v733_v49, %v630_v48  ;;  %v1317_v51 = vpop.f32.mrb[19].mxu0 }
 0x4aa   :  { %1464 = vtanh.f32 %v734_v50 }
 0x4ab   :  { %v738_v52 = vpop.f32.mrb[20].mxu0 }
 0x4ac   :  { %v1320_v54 = vpop.f32.mrb[21].mxu0  ;;  %v739_v55 = vadd.f32 %v738_v52, %v635_v53 }
 0x4ae   :  { %1466 = vtanh.f32 %v739_v55 }
 0x4af   :  { %v743_v57 = vpop.f32.mrb[22].mxu0 }
 0x4b0   :  { %v744_v58 = vadd.f32 %v743_v57, %v640_v56  ;;  %v1323_v59 = vpop.f32.mrb[23].mxu0  ;;  %v1463_v60 = vpop.eup %1462 }
 0x4b2   :  { %1468 = vtanh.f32 %v744_v58 }
 0x4b3   :  { %v748_v62 = vpop.f32.mrb[24].mxu0 }
 0x4b4   :  { %v1465_v63 = vpop.eup %1464  ;;  %v749_v0 = vadd.f32 %v748_v62, %v645_v61  ;;  %v1326_v2 = vpop.f32.mrb[25].mxu0 }
 0x4b5   :  { %v1402_v3 = vpack.c.bf16 %v1465_v63, %v1463_v60 }
 0x4b6   :  { %1470 = vtanh.f32 %v749_v0 }
 0x4b7   :  { %1403 = vmatpush3.bf16.msra.mxu1 %v1402_v3 }
 0x4b8   :  { %1404 = vmatprep.subr.bf16.mxu1 %v1509_v39  ;;  %v1467_v4 = vpop.eup %1466 }
 0x4bc   :  { %v1469_v5 = vpop.eup %1468 }
 0x4bd   :  { %v1405_v6 = vpack.c.bf16 %v1469_v5, %v1467_v4 }
 0x4bf   :  { %1406 = vmatpush3.bf16.msra.mxu1 %v1405_v6 }
 0x4c0   :  { %1335 = vmatprep.subr.mxu1 %v1506_v1  ;;  %v1471_v8 = vpop.eup %1470 }
 0x4c3   :  { %1336 = vmatpush3.msra.mxu1 %v1471_v8 }
 0x4c4   :  { %1338 = vmatmul.mubr.msk.f32.vlgmr.msra.gmra.mrb[24].mxu1 %vm205_vm3, %v1114_v7 }
 0x4c5   :  { %1340 = vmatprep.mubr.msk.f32.mxu1 %vm1507_vm2, %v1506_v1 }
 0x4c8   :  { %1341 = vmatmul.mubr.msk.f32.gmra.mrb[26].mxu1 %vm205_vm3, %v1115_v9 }
 0x4c9   :  { %1343 = vmatprep.mubr.msk.f32.mxu1 %vm1507_vm2, %v1506_v1 }
 0x4cc   :  { %1344 = vmatmul.mubr.msk.f32.gmra.mrb[28].mxu1 %vm205_vm3, %v1116_v10 }
 0x4cd   :  { %1346 = vmatprep.mubr.msk.f32.mxu1 %vm1507_vm2, %v1506_v1 }
 0x4d0   :  { %1347 = vmatmul.mubr.msk.f32.gmra.mrb[30].mxu1 %vm205_vm3, %v1117_v11 }
 0x4d1   :  { %1349 = vmatprep.mubr.msk.f32.mxu1 %vm1507_vm2, %v1506_v1 }
 0x4d4   :  { %1350 = vmatmul.mubr.msk.f32.gmra.mrb[32].mxu1 %vm205_vm3, %v1118_v12 }
 0x597   :  { %v875_v13 = vpop.f32.mrb[24].mxu1 }
 0x598   :  { %v1339_v15 = vpop.f32.mrb[25].mxu1  ;;  %v876_v16 = vadd.f32 %v875_v13, %v772_v14 }
 0x59a   :  { %1472 = vtanh.f32 %v876_v16 }
 0x59b   :  { %v880_v18 = vpop.f32.mrb[26].mxu1 }
 0x59c   :  { %v881_v19 = vadd.f32 %v880_v18, %v777_v17  ;;  %v1342_v20 = vpop.f32.mrb[27].mxu1 }
 0x59e   :  { %1474 = vtanh.f32 %v881_v19 }
 0x59f   :  { %v885_v21 = vpop.f32.mrb[28].mxu1 }
 0x5a0   :  { %v1345_v23 = vpop.f32.mrb[29].mxu1  ;;  %v886_v24 = vadd.f32 %v885_v21, %v782_v22 }
 0x5a2   :  { %1476 = vtanh.f32 %v886_v24 }
 0x5a3   :  { %v890_v26 = vpop.f32.mrb[30].mxu1 }
 0x5a4   :  { %v891_v27 = vadd.f32 %v890_v26, %v787_v25  ;;  %v1348_v28 = vpop.f32.mrb[31].mxu1  ;;  %v1473_v29 = vpop.eup %1472 }
 0x5a6   :  { %1478 = vtanh.f32 %v891_v27 }
 0x5a7   :  { %v895_v31 = vpop.f32.mrb[32].mxu1 }
 0x5a8   :  { %v1475_v32 = vpop.eup %1474  ;;  %v896_v33 = vadd.f32 %v895_v31, %v792_v30  ;;  %v1351_v34 = vpop.f32.mrb[33].mxu1 }
 0x5a9   :  { %v1408_v35 = vpack.c.bf16 %v1475_v32, %v1473_v29 }
 0x5aa   :  { %1480 = vtanh.f32 %v896_v33 }
 0x5ab   :  { %1409 = vmatpush3.bf16.msra.mxu0 %v1408_v35 }
 0x5ac   :  { %1410 = vmatprep.subr.bf16.mxu0 %v1509_v39  ;;  %v1477_v36 = vpop.eup %1476  ;;  %v1130_v39 = vld [vmem:[%s1876_s2 + $0xd0] sm:$0xff] }
 0x5b0   :  { %v1479_v37 = vpop.eup %1478 }
 0x5b1   :  { %v1411_v38 = vpack.c.bf16 %v1479_v37, %v1477_v36 }
 0x5b3   :  { %1412 = vmatpush3.bf16.msra.mxu0 %v1411_v38 }
 0x5b4   :  { %1360 = vmatprep.subr.mxu0 %v1506_v1  ;;  %v1481_v41 = vpop.eup %1480 }
 0x5b7   :  { %1361 = vmatpush3.msra.mxu0 %v1481_v41 }
 0x5b8   :  { %1363 = vmatmul.mubr.msk.f32.vlgmr.msra.gmra.mrb[26].mxu0 %vm205_vm3, %v1129_v40 }
 0x5b9   :  { %1365 = vmatprep.mubr.msk.f32.mxu0 %vm1507_vm2, %v1506_v1 }
 0x5bc   :  { %1366 = vmatmul.mubr.msk.f32.gmra.mrb[28].mxu0 %vm205_vm3, %v1130_v39 }
 0x5bd   :  { %1368 = vmatprep.mubr.msk.f32.mxu0 %vm1507_vm2, %v1506_v1 }
 0x5c0   :  { %1369 = vmatmul.mubr.msk.f32.gmra.mrb[30].mxu0 %vm205_vm3, %v1131_v42 }
 0x5c1   :  { %1371 = vmatprep.mubr.msk.f32.mxu0 %vm1507_vm2, %v1506_v1 }
 0x5c4   :  { %1372 = vmatmul.mubr.msk.f32.gmra.mrb[32].mxu0 %vm205_vm3, %v1132_v43 }
 0x5c5   :  { %1374 = vmatprep.mubr.msk.f32.mxu0 %vm1507_vm2, %v1506_v1 }
 0x5c8   :  { %1375 = vmatmul.mubr.msk.f32.gmra.mrb[34].mxu0 %vm205_vm3, %v1133_v44 }
 0x68b   :  { %v1018_v46 = vpop.f32.mrb[26].mxu0 }
 0x68c   :  { %v1019_v47 = vadd.f32 %v1018_v46, %v919_v45  ;;  %v1364_v48 = vpop.f32.mrb[27].mxu0 }
 0x68e   :  { %1038 = vst [vmem:[#allocation2] sm:$0x1] %v1019_v47 }
 0x68f   :  { %v1023_v49 = vpop.f32.mrb[28].mxu0 }
 0x690   :  { %1493 = shalt.err (!%p1490_p4)
}
 0x691   :  { %s1494_s1 = scalar_lea.hbm %s1878_s4, 16 }
 0x692   :  { %p1495_p5 = scmp.ne.s32.totalorder %s1878_s4, %s1494_s1  ;;  %p1498_p6 = scmp.lt.u32.totalorder %s1494_s1, %s1878_s4 }
 0x694   :  { %p1500_p7 = pnand %p1498_p6, %p1495_p5 }
 0x696   :  { %1503 = shalt.err (!%p1500_p7)
}
 0x697   :  { %1048 = dma.vmem_to_hbm [thread:$0]  %s1046_s8, 16, %s1878_s4, [#allocation3]   ;;  %v1367_v1 = vpop.f32.mrb[29].mxu0 }
 0x698   :  { %v1027_v50 = vpop.f32.mrb[30].mxu0 }
 0x699   :  { %v1370_v51 = vpop.f32.mrb[31].mxu0 }
 0x69a   :  { %v1031_v52 = vpop.f32.mrb[32].mxu0 }
 0x69b   :  { %v1373_v53 = vpop.f32.mrb[33].mxu0 }
 0x69c   :  { %v1035_v54 = vpop.f32.mrb[34].mxu0 }
 0x69d   :  { %v1376_v55 = vpop.f32.mrb[35].mxu0 }
 0x69e   :  { %1504 = dma.done.wait [#allocation3], 16  }
 0x69f   :  { %1505 = vsyncadd [#allocation3], 4294967280 }
 0x6a0   :  { %1052 = vsyncpa [#allocation3], 1 }

</bundles_post_ra>
